<compile_context>
chip_gen: v7x
topology: tpu7x:2x2x1
jax: 0.10.0
libtpu: 0.0.40
codegen_flags: <defaults>
</compile_context>

<pallas_src>
import functools
import math

import numpy as np
import jax
import jax.numpy as jnp
from jax import lax
from jax.experimental import pallas as pl
from jax.experimental.pallas import tpu as pltpu


_CHUNK_ROWS = 256          # rows of |y| materialized at once inside the kernel
_MT_BYTES_CAP = 12 << 20   # bf16 Kronecker DFT matrix must fit comfortably in VMEM


@functools.lru_cache(maxsize=8)
def _kron_rfft2_matrix(H, W):
    """Device-resident bf16 (H*W, K_out) matrix whose columns are Re/Im of rfft2.

    Built on the host in float64 (no per-call jnp cos/sin pass), cast once to bf16.
    """
    Wf = W // 2 + 1
    k_true = 2 * H * Wf
    k_out = ((k_true + 127) // 128) * 128          # lane-dense multiple of 128
    h = np.arange(H)
    u = np.arange(H)
    w = np.arange(W)
    v = np.arange(Wf)
    # exp(-2*pi*i*(u*h/H + v*w/W)); keep phases in [0, 1) for accuracy.
    ph = (np.outer(h, u) % H) / float(H)                               # (H, H)
    pw = (np.outer(w, v) % W) / float(W)                               # (W, Wf)
    phase = (ph[:, None, :, None] + pw[None, :, None, :]) % 1.0        # (H,W,H,Wf)
    ang = (2.0 * math.pi) * phase
    re = np.cos(ang).reshape(H * W, H * Wf)
    im = (-np.sin(ang)).reshape(H * W, H * Wf)
    mt = np.concatenate([re, im], axis=1)                              # (H*W, 2*H*Wf)
    if k_out != k_true:
        mt = np.pad(mt, ((0, 0), (0, k_out - k_true)))                 # zero cols -> 0
    return jnp.asarray(mt, dtype=jnp.bfloat16), k_out


def _make_kernel(TK, KT, chunk, n_full, tail):
    """Kernel over one (B, HW) batch block and one TK-wide frequency-column tile."""

    def kernel(img_ref, gt_ref, mt_ref, out_ref):
        def rhs():
            if KT == 1:
                return mt_ref[...]
            col0 = pl.multiple_of(pl.program_id(1) * TK, 128)
            return mt_ref[:, pl.ds(col0, TK)]

        def chunk_partial(row0, rows):
            # diff in f32, cast to bf16 right before the MXU matmul (f32 accumulate).
            d = (img_ref[pl.ds(row0, rows), :].astype(jnp.float32)
                 - gt_ref[pl.ds(row0, rows), :].astype(jnp.float32))
            y = jnp.dot(d.astype(jnp.bfloat16), rhs(),
                        preferred_element_type=jnp.float32)            # (rows, TK)
            # Collapse the chunk to 8 sublane rows with plain VPU adds.
            return jnp.sum(jnp.abs(y).reshape(rows // 8, 8, TK), axis=0)

        acc = jnp.zeros((8, TK), jnp.float32)
        if n_full > 0:
            def body(c, a):
                return a + chunk_partial(pl.multiple_of(c * chunk, chunk), chunk)
            acc = lax.fori_loop(0, n_full, body, acc, unroll=(n_full <= 8))
        if tail > 0:
            acc = acc + chunk_partial(n_full * chunk, tail)
        out_ref[...] = acc

    return kernel


def loss_freq_reco(imgs, gts):
    """Pallas implementation of LossFreqReco.forward for NCHW inputs."""
    N, C, H, W = imgs.shape
    assert gts.shape == imgs.shape
    Wf = W // 2 + 1
    NC, HW = N * C, H * W
    denom = float(N * (2 * C) * H * Wf)   # element count of cat([real, imag], dim=1)

    mt, k_out = _kron_rfft2_matrix(H, W)
    mt_bytes = HW * k_out * 2             # bf16
    if mt_bytes > _MT_BYTES_CAP:
        # TODO(synk): for large H*W switch to a separable two-stage (row then column
        # DFT) kernel; the fused Kronecker DFT matrix no longer fits in VMEM.
        raise NotImplementedError("loss_freq_reco Pallas kernel targets small H, W")

    itemsize = min(imgs.dtype.itemsize, gts.dtype.itemsize)
    sub = max(8, 32 // itemsize)          # sublane multiple: f32->8, bf16->16, int8->32

    # ---- batch block B from an explicit DMA/VMEM budget --------------------------
    # ~1 MiB of per-array per-step input traffic (amortizes ~0.35us/step overhead),
    # capped so 2 arrays x 2 pipeline buffers stay <= ~8 MiB on every generation
    # (v5e 16 MiB scoped default, v7x 64 MiB physical VMEM).
    b_target = max(sub, ((1 << 20) // (HW * itemsize)) // sub * sub)
    b_cap = max(sub, ((8 << 20) // (4 * HW * itemsize)) // sub * sub)
    nc_rounded = ((NC + sub - 1) // sub) * sub
    B = max(sub, min(b_target, b_cap, nc_rounded))
    G = pl.cdiv(NC, B)
    if G > 1 and G % 2 == 1:              # prefer an even step count for v7x megacore
        B = max(sub, ((pl.cdiv(NC, G + 1) + sub - 1) // sub) * sub)
        G = pl.cdiv(NC, B)
    NC_pad = G * B

    # ---- K (frequency-column) split: >=2 parallel grid steps even for tiny NC ----
    if G >= 2 or k_out < 256:
        TK, KT = k_out, 1
    else:
        TK, KT = 128, k_out // 128

    chunk = min(B, _CHUNK_ROWS)
    n_full, tail = divmod(B, chunk)
    if n_full == 1 and tail == 0:
        n_full, tail = 0, B               # single chunk -> static straight-line path

    imgs2 = imgs.reshape(NC, HW)          # keep original dtype; cast in-kernel
    gts2 = gts.reshape(NC, HW)
    if NC_pad != NC:
        pad = ((0, NC_pad - NC), (0, 0))  # zero slabs -> zero diff -> 0 contribution
        imgs2 = jnp.pad(imgs2, pad)
        gts2 = jnp.pad(gts2, pad)

    in_block_bytes = B * HW * (imgs.dtype.itemsize + gts.dtype.itemsize)
    est = (2 * mt_bytes + 2 * in_block_bytes + 2 * 8 * TK * 4
           + 3 * chunk * (HW + TK) * 4 + (2 << 20))
    vmem_limit = int(min(50 << 20, max(32 << 20, est + (8 << 20))))

    cost = pl.CostEstimate(
        flops=2 * NC_pad * HW * k_out,
        transcendentals=0,
        bytes_accessed=(NC_pad * HW * (imgs.dtype.itemsize + gts.dtype.itemsize)
                        + mt_bytes + G * 8 * k_out * 4),
    )

    kernel = _make_kernel(TK, KT, chunk, n_full, tail)

    def call(single_buffer_mt):
        if single_buffer_mt:
            # Constant index_map -> one pipeline buffer suffices; reclaims up to
            # mt_bytes of VMEM (matters for large H*W and v7x's 64 MiB/TC).
            mt_spec = pl.BlockSpec((HW, k_out), lambda i, j: (0, 0),
                                   pipeline_mode=pl.Buffered(1))
        else:
            mt_spec = pl.BlockSpec((HW, k_out), lambda i, j: (0, 0))
        return pl.pallas_call(
            kernel,
            out_shape=jax.ShapeDtypeStruct((G * 8, k_out), jnp.float32),
            grid_spec=pltpu.PrefetchScalarGridSpec(
                num_scalar_prefetch=0,
                grid=(G, KT),
                in_specs=[
                    pl.BlockSpec((B, HW), lambda i, j: (i, 0)),
                    pl.BlockSpec((B, HW), lambda i, j: (i, 0)),
                    mt_spec,
                ],
                out_specs=pl.BlockSpec((8, TK), lambda i, j: (i, j)),
            ),
            compiler_params=pltpu.CompilerParams(
                dimension_semantics=("parallel", "parallel"),
                vmem_limit_bytes=vmem_limit,
            ),
            cost_estimate=cost,
        )(imgs2, gts2, mt)

    try:
        partials = call(True)
    except Exception:
        # Fallback if this jax build's pallas_call lowering rejects pipeline_mode;
        # identical semantics, just default double-buffering of the DFT matrix.
        partials = call(False)

    return jnp.sum(partials) / denom


def _reference_loss(imgs, gts):
    fi = jnp.fft.rfftn(imgs, axes=(2, 3))
    fg = jnp.fft.rfftn(gts, axes=(2, 3))
    ci = jnp.concatenate([jnp.real(fi), jnp.imag(fi)], axis=1)
    cg = jnp.concatenate([jnp.real(fg), jnp.imag(fg)], axis=1)
    return jnp.mean(jnp.abs(ci - cg))


if __name__ == "__main__":
    key = jax.random.PRNGKey(0)
    k1, k2 = jax.random.split(key)
    N, C, H, W = 2, 4, 16, 16
    imgs = jax.random.normal(k1, (N, C, H, W), dtype=jnp.float32)
    gts = jax.random.normal(k2, (N, C, H, W), dtype=jnp.float32)

    loss = loss_freq_reco(imgs, gts)
    jax.block_until_ready(loss)

    ref = _reference_loss(imgs, gts)
    jax.block_until_ready(ref)
    assert jnp.allclose(loss, ref, rtol=2e-3, atol=2e-3), (loss, ref)

    print("KERNEL_OK")
</pallas_src>

<mosaic_0001>
module attributes {stable_mosaic.version = 11 : i64} {
  func.func @kernel(%arg0: i32, %arg1: i32, %arg2: memref<8x256xf32, #tpu.memory_space<vmem>>, %arg3: memref<8x256xf32, #tpu.memory_space<vmem>>, %arg4: memref<256x384xbf16, #tpu.memory_space<vmem>>, %arg5: memref<8x128xf32, #tpu.memory_space<vmem>>) attributes {dimension_semantics = [#tpu.dimension_semantics<parallel>, #tpu.dimension_semantics<parallel>], iteration_bounds = array<i64: 1, 3>, scalar_prefetch = 0 : i64, scratch_operands = 0 : i64, tpu.core_type = #tpu.core_type<tc>, window_params = [{transform_indices = @transform_0, window_bounds = array<i64: 8, 256>}, {transform_indices = @transform_1, window_bounds = array<i64: 8, 256>}, {pipeline_mode = #tpu.pipeline_mode<synchronous>, transform_indices = @transform_2, window_bounds = array<i64: 256, 384>}, {transform_indices = @transform_3, window_bounds = array<i64: 8, 128>}]} {
    %cst = arith.constant 0.000000e+00 : f32
    %0 = vector.broadcast %cst : f32 to vector<8x128xf32>
    %c0 = arith.constant 0 : index
    %c0_0 = arith.constant 0 : index
    %1 = vector.load %arg2[%c0, %c0_0] : memref<8x256xf32, #tpu.memory_space<vmem>>, vector<8x256xf32>
    %c0_1 = arith.constant 0 : index
    %c0_2 = arith.constant 0 : index
    %2 = vector.load %arg3[%c0_1, %c0_2] : memref<8x256xf32, #tpu.memory_space<vmem>>, vector<8x256xf32>
    %3 = arith.subf %1, %2 : vector<8x256xf32>
    %4 = arith.truncf %3 : vector<8x256xf32> to vector<8x256xbf16>
    %c128_i32 = arith.constant 128 : i32
    %5 = arith.muli %arg1, %c128_i32 : i32
    %6 = tpu.assume_multiple %5, 128 : i32
    %c0_3 = arith.constant 0 : index
    %7 = arith.index_cast %6 : i32 to index
    %8 = vector.load %arg4[%c0_3, %7] : memref<256x384xbf16, #tpu.memory_space<vmem>>, vector<256x128xbf16>
    %cst_4 = arith.constant dense<0.000000e+00> : vector<8x128xf32>
    %9 = tpu.matmul %4, %8, %cst_4 {dimension_numbers = #tpu.dot_dimension_numbers<[1], [0], [0], [1], [0, 0, 1, 1], [], []>} : vector<8x256xbf16>, vector<256x128xbf16>, vector<8x128xf32> -> vector<8x128xf32>
    %10 = math.absf %9 : vector<8x128xf32>
    %11 = vector.shape_cast %10 : vector<8x128xf32> to vector<1x8x128xf32>
    %cst_5 = arith.constant dense<0.000000e+00> : vector<8x128xf32>
    %12 = vector.multi_reduction <add>, %11, %cst_5 [0] : vector<1x8x128xf32> to vector<8x128xf32>
    %13 = arith.addf %0, %12 : vector<8x128xf32>
    %c0_6 = arith.constant 0 : index
    %c0_7 = arith.constant 0 : index
    %14 = vector.load %arg5[%c0_6, %c0_7] : memref<8x128xf32, #tpu.memory_space<vmem>>, vector<8x128xf32>
    tpu.vector_store %arg5[%c0_6, %c0_7], %13 {strides = array<i32>} : memref<8x128xf32, #tpu.memory_space<vmem>>, vector<8x128xf32>,
    return
  }
  func.func @transform_0(%arg0: i32, %arg1: i32) -> (i32, i32) {
    %c0_i32 = arith.constant 0 : i32
    %c0_i32_0 = arith.constant 0 : i32
    return %arg0, %c0_i32 : i32, i32
  }
  func.func @transform_1(%arg0: i32, %arg1: i32) -> (i32, i32) {
    %c0_i32 = arith.constant 0 : i32
    %c0_i32_0 = arith.constant 0 : i32
    return %arg0, %c0_i32 : i32, i32
  }
  func.func @transform_2(%arg0: i32, %arg1: i32) -> (i32, i32) {
    %c0_i32 = arith.constant 0 : i32
    %c0_i32_0 = arith.constant 0 : i32
    %c0_i32_1 = arith.constant 0 : i32
    return %c0_i32, %c0_i32_0 : i32, i32
  }
  func.func @transform_3(%arg0: i32, %arg1: i32) -> (i32, i32) {
    %c0_i32 = arith.constant 0 : i32
    return %arg0, %arg1 : i32, i32
  }
}

module attributes {stable_mosaic.version = 11 : i64} {
  func.func @kernel(%arg0: i32, %arg1: i32, %arg2: memref<8x256xf32, #tpu.memory_space<vmem>>, %arg3: memref<8x256xf32, #tpu.memory_space<vmem>>, %arg4: memref<256x384xbf16, #tpu.memory_space<vmem>>, %arg5: memref<8x128xf32, #tpu.memory_space<vmem>>) attributes {dimension_semantics = [#tpu.dimension_semantics<parallel>, #tpu.dimension_semantics<parallel>], iteration_bounds = array<i64: 1, 3>, scalar_prefetch = 0 : i64, scratch_operands = 0 : i64, tpu.core_type = #tpu.core_type<tc>, window_params = [{transform_indices = @transform_0, window_bounds = array<i64: 8, 256>}, {transform_indices = @transform_1, window_bounds = array<i64: 8, 256>}, {pipeline_mode = #tpu.pipeline_mode<synchronous>, transform_indices = @transform_2, window_bounds = array<i64: 256, 384>}, {transform_indices = @transform_3, window_bounds = array<i64: 8, 128>}]} {
    %cst = arith.constant 0.000000e+00 : f32
    %0 = vector.broadcast %cst : f32 to vector<8x128xf32>
    %c0 = arith.constant 0 : index
    %c0_0 = arith.constant 0 : index
    %1 = vector.load %arg2[%c0, %c0_0] : memref<8x256xf32, #tpu.memory_space<vmem>>, vector<8x256xf32>
    %c0_1 = arith.constant 0 : index
    %c0_2 = arith.constant 0 : index
    %2 = vector.load %arg3[%c0_1, %c0_2] : memref<8x256xf32, #tpu.memory_space<vmem>>, vector<8x256xf32>
    %3 = arith.subf %1, %2 : vector<8x256xf32>
    %4 = arith.truncf %3 : vector<8x256xf32> to vector<8x256xbf16>
    %c128_i32 = arith.constant 128 : i32
    %5 = arith.muli %arg1, %c128_i32 : i32
    %6 = tpu.assume_multiple %5, 128 : i32
    %c0_3 = arith.constant 0 : index
    %7 = arith.index_cast %6 : i32 to index
    %8 = vector.load %arg4[%c0_3, %7] : memref<256x384xbf16, #tpu.memory_space<vmem>>, vector<256x128xbf16>
    %cst_4 = arith.constant dense<0.000000e+00> : vector<8x128xf32>
    %9 = tpu.matmul %4, %8, %cst_4 {dimension_numbers = #tpu.dot_dimension_numbers<[1], [0], [0], [1], [0, 0, 1, 1], [], []>} : vector<8x256xbf16>, vector<256x128xbf16>, vector<8x128xf32> -> vector<8x128xf32>
    %10 = math.absf %9 : vector<8x128xf32>
    %11 = vector.shape_cast %10 : vector<8x128xf32> to vector<1x8x128xf32>
    %cst_5 = arith.constant dense<0.000000e+00> : vector<8x128xf32>
    %12 = vector.multi_reduction <add>, %11, %cst_5 [0] : vector<1x8x128xf32> to vector<8x128xf32>
    %13 = arith.addf %0, %12 : vector<8x128xf32>
    %c0_6 = arith.constant 0 : index
    %c0_7 = arith.constant 0 : index
    %14 = vector.load %arg5[%c0_6, %c0_7] : memref<8x128xf32, #tpu.memory_space<vmem>>, vector<8x128xf32>
    tpu.vector_store %arg5[%c0_6, %c0_7], %13 {strides = array<i32>} : memref<8x128xf32, #tpu.memory_space<vmem>>, vector<8x128xf32>,
    return
  }
  func.func @transform_0(%arg0: i32, %arg1: i32) -> (i32, i32) {
    %c0_i32 = arith.constant 0 : i32
    %c0_i32_0 = arith.constant 0 : i32
    return %arg0, %c0_i32 : i32, i32
  }
  func.func @transform_1(%arg0: i32, %arg1: i32) -> (i32, i32) {
    %c0_i32 = arith.constant 0 : i32
    %c0_i32_0 = arith.constant 0 : i32
    return %arg0, %c0_i32 : i32, i32
  }
  func.func @transform_2(%arg0: i32, %arg1: i32) -> (i32, i32) {
    %c0_i32 = arith.constant 0 : i32
    %c0_i32_0 = arith.constant 0 : i32
    %c0_i32_1 = arith.constant 0 : i32
    return %c0_i32, %c0_i32_0 : i32, i32
  }
  func.func @transform_3(%arg0: i32, %arg1: i32) -> (i32, i32) {
    %c0_i32 = arith.constant 0 : i32
    return %arg0, %arg1 : i32, i32
  }
}

</mosaic_0001>

<bundles_post_ra>
// kernel: tpu_custom_call.1
= control target key start
LH: loop header
LB: loop body
LE: loop exit
PB: predicated region body
PF: predicated region fallthrough
CT: control target
= control target key end

     0   :  { %8 = vsyncpa [#allocation3], 0  ;;  %s1094_s0 = inlined_call_operand.hbm [shape: f32[8,256], index: 0, kind: input, shape index: {}]   ;;  %s1095_s1 = inlined_call_operand.hbm [shape: f32[8,256], index: 1, kind: input, shape index: {}]   ;;  %s1096_s2 = inlined_call_operand.hbm [shape: bf16[256,384], index: 2, kind: input, shape index: {}]   ;;  %s1097_s3 = inlined_call_operand.hbm [shape: f32[8,384], index: 3, kind: output, shape index: {}]  }
   0x1   :  { %9 = vsyncpa [#allocation6], 0 }
   0x2   :  { %10 = vsyncpa [#allocation4], 0 }
   0x3   :  { %12 = vsyncpa [#allocation4 + $0x1], 0  ;;  %s872_s12 = smov 0   ;;  %s874_s13 = smov 0  }
   0x4   :  { %s876_s14 = smov 0   ;;  %s878_s15 = smov 0  }
   0x5   :  { %s880_s16 = smov 0   ;;  %s882_s17 = smov 0  }
   0x6 LB: > { %s515_s18 = sadd.s32 4294967295, %s844_s17   ;;  %s516_s19 = sadd.s32 4294967294, %s844_s17   ;;  %s844_s17 = sphi %s882_s17, %s18_s17   ;;  %s840_s16 = sphi %s880_s16, %s1116_s16   ;;  %s836_s15 = sphi %s878_s15, %s1115_s15   ;;  %s832_s14 = sphi %s876_s14, %s1114_s14   ;;  %s828_s13 = sphi %s874_s13, %s1113_s13   ;;  %s824_s12 = sphi %s872_s12, %s1112_s12  }
   0x7   : > { %s27_s20 = sadd.s32 1, %s840_s16  ;;  %s112_s21 = sadd.s32 1, %s832_s14 }
   0x8   : > { %p28_p0 = scmp.ge.s32.totalorder %s27_s20, 3  ;;  %p122_p1 = scmp.ne.s32.totalorder %s832_s14, %s828_s13 }
   0x9   : > { %p123_p2 = scmp.eq.s32.totalorder %s515_s18, 2  ;;  %p128_p3 = scmp.ne.s32.totalorder %s828_s13, %s824_s12 }
   0xa   : > { %s1118_s20 = smov (%p28_p0, %s27_s20), 0  ;;  %p129_p5 = scmp.eq.s32.totalorder %s516_s19, 2 }
   0xb   : > { %p912_p4 = por %p123_p2, %p122_p1  ;;  %s108_s23 = ssub.s32 %s840_s16, %s1118_s20 }
   0xc   : > { %p517_p6 = scmp.ge.s32.totalorder %s844_s17, 1  ;;  %p110_p7 = scmp.eq.s32.totalorder %s108_s23, 0 }
   0xd   : > { %s1102_s22 = scalar_select %p912_p4, 1, 0 }
   0xe   : > { %p919_p8 = por %p129_p5, %p128_p3  ;;  %p136_p9 = scmp.lt.s32.totalorder %s844_s17, 4 }
   0xf   : > { %s925_s25 = scalar_select %p110_p7, %s832_s14, %s112_s21  }
  0x10   : > { %s1103_s24 = scalar_select %p919_p8, 1, 0 }
  0x11   : > { %p927_p10 = pnand %p517_p6, %p136_p9  ;;  %p931_p11 = scmp.eq.s32.totalorder %s515_s18, 0 }
  0x12   : > { %s846_s28 = smov [#allocation5]   ;;  %s847_s4 = smov [#allocation2]  }
  0x13   : > { %s1104_s26 = scalar_select %p927_p10, 1, 0 }
  0x14   : > { %s1105_s27 = scalar_select %p931_p11, 1, 0 }
  0x15   : > { %p584_p12 = pneg %p927_p10  ;;  %s166_s29 = sshll.u32 %s846_s28, 4  ;;  %s167_s29 = int_to_ptr.vmem [resolvable:$true] %s166_s29 }
  0x16   : > { %s152_s5 = sshll.u32 %s847_s4, 4  ;;  %s674_s8 = scalar_lea.hbm %s1095_s1, 256  ;;  %s943_s5 = int_to_ptr.vmem [resolvable:$true] %s152_s5 }
  0x17   : > { %p939_p13 = pnand %p931_p11, %p584_p12  ;;  %p675_p0 = scmp.ne.s32.totalorder %s1095_s1, %s674_s8 }
  0x18   : > { %p681_p5 = scmp.lt.u32.totalorder %s674_s8, %s1095_s1 }
  0x19   : > { %p953_p1 = pneg %p939_p13 }
  0x1b   : > { %p677_p2 = pnand %p953_p1, %p675_p0 }
  0x1d   : > { %p678_p3 = pneg %p677_p2 }
  0x1f   : > { %p683_p6 = pnand %p681_p5, %p678_p3 }
  0x21   : > { %686 = shalt.err (!%p683_p6)
}
  0x22   : > { %s687_s21 = scalar_lea.vmem %s167_s29, 256  ;;  %p695_p8 = scmp.lt.s32.totalorder %s167_s29, %s167_s29 }
  0x23   : > { %p688_p7 = scmp.ne.s32.totalorder %s167_s29, %s687_s21  ;;  %p696_p4 = scmp.lt.s32.totalorder %s687_s21, %s687_s21 }
  0x25   : > { %p690_p9 = pnand %p688_p7, %p953_p1  ;;  %p697_p11 = por %p696_p4, %p695_p8 }
  0x27   : > { %p691_p12 = pneg %p690_p9 }
  0x29   : > { %p698_p10 = pnand %p697_p11, %p691_p12 }
  0x2b   : > { %701 = shalt.err (!%p698_p10)
}
  0x2c   : > { %590 = dma.hbm_to_vmem [thread:$0]  (!%p939_p13), %s1095_s1, 256, %s167_s29, [#allocation6]  }
  0x2d   : > { %s702_s7 = scalar_lea.hbm %s1094_s0, 256 }
  0x2e   : > { %p703_p0 = scmp.ne.s32.totalorder %s1094_s0, %s702_s7  ;;  %p709_p8 = scmp.lt.u32.totalorder %s702_s7, %s1094_s0 }
  0x30   : > { %p705_p2 = pnand %p703_p0, %p953_p1 }
  0x32   : > { %p706_p4 = pneg %p705_p2 }
  0x34   : > { %p711_p10 = pnand %p709_p8, %p706_p4 }
  0x36   : > { %714 = shalt.err (!%p711_p10)
}
  0x37   : > { %s715_s29 = scalar_lea.vmem %s943_s5, 256  ;;  %p723_p6 = scmp.lt.s32.totalorder %s943_s5, %s943_s5 }
  0x38   : > { %p716_p11 = scmp.ne.s32.totalorder %s943_s5, %s715_s29  ;;  %p724_p7 = scmp.lt.s32.totalorder %s715_s29, %s715_s29 }
  0x3a   : > { %p718_p3 = pnand %p716_p11, %p953_p1  ;;  %p725_p9 = por %p724_p7, %p723_p6 }
  0x3c   : > { %p719_p5 = pneg %p718_p3 }
  0x3e   : > { %p726_p12 = pnand %p725_p9, %p719_p5 }
  0x40   : > { %729 = shalt.err (!%p726_p12)
}
  0x41   : > { %587 = dma.hbm_to_vmem [thread:$0]  (!%p939_p13), %s1094_s0, 256, %s943_s5, [#allocation3]  }
  0x42   : > { %s848_s23 = smov [#allocation7]   ;;  %s730_s7 = scalar_lea.hbm %s1096_s2, 6144 }
  0x43   : > { %s176_s28 = sshll.u32 %s848_s23, 4  ;;  %p731_p0 = scmp.ne.s32.totalorder %s1096_s2, %s730_s7  ;;  %s177_s28 = int_to_ptr.vmem [resolvable:$true] %s176_s28 }
  0x44   : > { %p737_p8 = scmp.lt.u32.totalorder %s730_s7, %s1096_s2 }
  0x45   : > { %p733_p2 = pnand %p731_p0, %p953_p1 }
  0x47   : > { %p734_p4 = pneg %p733_p2 }
  0x49   : > { %p739_p10 = pnand %p737_p8, %p734_p4 }
  0x4b   : > { %742 = shalt.err (!%p739_p10)
}
  0x4c   : > { %s743_s5 = scalar_lea.vmem %s177_s28, 6144  ;;  %p751_p6 = scmp.lt.s32.totalorder %s177_s28, %s177_s28 }
  0x4d   : > { %p744_p11 = scmp.ne.s32.totalorder %s177_s28, %s743_s5  ;;  %p752_p7 = scmp.lt.s32.totalorder %s743_s5, %s743_s5 }
  0x4f   : > { %p746_p3 = pnand %p744_p11, %p953_p1  ;;  %p753_p9 = por %p752_p7, %p751_p6 }
  0x51   : > { %p747_p5 = pneg %p746_p3 }
  0x53   : > { %p754_p12 = pnand %p753_p9, %p747_p5 }
  0x55   : > { %757 = shalt.err (!%p754_p12)
}
  0x56   : > { %s849_s29 = smov 192   ;;  %s850_s19 = smov 12  }
  0x57   : > { %593 = dma.hbm_to_vmem [thread:$0]  (!%p939_p13), %s1096_s2, 6144, %s177_s28, [#allocation6], %s849_s29, %s849_s29, %s850_s19  }
  0x58   : > { %p1108_p0 = scmp.ne.s32.totalorder %s1104_s26, 0 }
  0x59   : > { %p1109_p2 = scmp.ne.s32.totalorder (!%p1108_p0), %s1105_s27, 0 }
  0x5a   : > { %192 = sbr.rel (%p1108_p0) target bundleno = 368 (0x170), region = 32 }
  0x61   : > { %811 = dma.done.wait (%p1109_p2), [#allocation3], 256  }
  0x62   : > { %813 = vsyncadd (%p1109_p2), [#allocation3], 4294967040 }
  0x63   : > { %815 = dma.done.wait (%p1109_p2), [#allocation6], 6400  }
  0x64   : > { %817 = vsyncadd (%p1109_p2), [#allocation6], 4294960896  ;;  %s526_s30 = sshll.u32 %s836_s15, 7  ;;  %v221_v11 = vld [vmem:[#allocation2 + $0x8] sm:$0xff]  ;;  %v223_v12 = vld [vmem:[#allocation5 + $0x8] sm:$0xff]  ;;  %s216_s27 = sand.u32 1, %s828_s13  }
  0x65   : > { %s229_s11 = sshra.s32 %s526_s30, 7  ;;  %v225_v13 = vsub.f32 %v221_v11, %v223_v12  ;;  %v220_v18 = vld [vmem:[#allocation2] sm:$0xff]  ;;  %v222_v19 = vld [vmem:[#allocation5] sm:$0xff]  ;;  %s525_s4 = sshll.u32 %s216_s27, 3 }
  0x66   : > { %s527_s28 = sshll.u32 %s229_s11, 2  ;;  %v224_v21 = vsub.f32 %v220_v18, %v222_v19  ;;  %s218_s6 = scalar_lea.vmem [#allocation8], %s525_s4 }
  0x67   : > { %s1023_s26 = scalar_lea.vmem [#allocation7], %s527_s28  ;;  %v227_v15 = vpack.c.bf16 %v225_v13, %v225_v13  ;;  %s421_s7 = sshll.u32 %s218_s6, 4  ;;  %s1049_s7 = int_to_ptr.vmem [resolvable:$true] %s421_s7 }
  0x68   : > { %v658_v0 = vld [vmem:[%s1023_s26 + $0xc0] ss:$12 sps:$4 sm:$0xff]   ;;  %v660_v2 = vld [vmem:[%s1023_s26 + $0xd8] ss:$12 sps:$4 sm:$0xff]   ;;  %v662_v4 = vld [vmem:[%s1023_s26 + $0xf0] ss:$12 sps:$4 sm:$0xff]   ;;  %v226_v23 = vpack.c.bf16 %v224_v21, %v224_v21  ;;  %s1047_s10 = scalar_lea.hbm %s1097_s3, %s526_s30 }
  0x69   : > { %v659_v1 = vld [vmem:[%s1023_s26] ss:$12 sps:$4 sm:$0xff]   ;;  %548 = vmatprep.subr.bf16.mxu0 %v658_v0  ;;  %v661_v3 = vld [vmem:[%s1023_s26 + $0x18] ss:$12 sps:$4 sm:$0xff]   ;;  %v663_v5 = vld [vmem:[%s1023_s26 + $0x30] ss:$12 sps:$4 sm:$0xff]   ;;  %393 = vmatprep.mubr.bf16.mxu0 %v227_v15 }
  0x6a   : > { %549 = vmatpush3.bf16.msra.mxu0 %v659_v1  ;;  %v664_v6 = vld [vmem:[%s1023_s26 + $0x108] ss:$12 sps:$4 sm:$0xff]   ;;  %v666_v8 = vld [vmem:[%s1023_s26 + $0x120] ss:$12 sps:$4 sm:$0xff]   ;;  %v668_v10 = vld [vmem:[%s1023_s26 + $0x138] ss:$12 sps:$4 sm:$0xff]  }
  0x6b   : > { %550 = vmatprep.subr.bf16.mxu0 %v660_v2  ;;  %v665_v7 = vld [vmem:[%s1023_s26 + $0x48] ss:$12 sps:$4 sm:$0xff]   ;;  %v667_v9 = vld [vmem:[%s1023_s26 + $0x60] ss:$12 sps:$4 sm:$0xff]   ;;  %v669_v14 = vld [vmem:[%s1023_s26 + $0x78] ss:$12 sps:$4 sm:$0xff]  }
  0x6c   : > { %v670_v16 = vld [vmem:[%s1023_s26 + $0x150] ss:$12 sps:$4 sm:$0xff]   ;;  %v672_v20 = vld [vmem:[%s1023_s26 + $0x168] ss:$12 sps:$4 sm:$0xff]   ;;  %s406_s18 = scalar_lea.sflag [#allocation4], %s216_s27  ;;  %s758_s5 = scalar_lea.vmem %s1049_s7, 128 }
  0x6d   : > { %v671_v17 = vld [vmem:[%s1023_s26 + $0x90] ss:$12 sps:$4 sm:$0xff]   ;;  %v673_v22 = vld [vmem:[%s1023_s26 + $0xa8] ss:$12 sps:$4 sm:$0xff]   ;;  %p759_p13 = scmp.ne.s32.totalorder %s1049_s7, %s758_s5  ;;  %p1110_p1 = scmp.ne.s32.totalorder %s1102_s22, 0 }
  0x6e   : > { %551 = vmatpush3.bf16.msra.mxu0 %v661_v3  ;;  %s851_s29 = smov [#allocation8]  }
  0x6f   : > { %552 = vmatprep.subr.bf16.mxu0 %v662_v4  ;;  %p760_p4 = pnand %p759_p13, %p1110_p1  ;;  %s762_s19 = sshll.u32 %s851_s29, 4  ;;  %s763_s19 = int_to_ptr.vmem [resolvable:$false] %s762_s19 }
  0x70   : > { %s764_s15 = scalar_lea.vmem %s763_s19, 256  ;;  %p765_p10 = scmp.lt.s32.totalorder %s1049_s7, %s763_s19 }
  0x71   : > { %p761_p8 = pneg %p760_p4  ;;  %p766_p11 = scmp.lt.s32.totalorder %s764_s15, %s758_s5 }
  0x72   : > { %553 = vmatpush3.bf16.msra.mxu0 %v663_v5 }
  0x73   : > { %554 = vmatprep.subr.bf16.mxu0 %v664_v6  ;;  %p767_p3 = por %p766_p11, %p765_p10 }
  0x75   : > { %p768_p5 = pnand %p767_p3, %p761_p8 }
  0x76   : > { %555 = vmatpush3.bf16.msra.mxu0 %v665_v7 }
  0x77   : > { %556 = vmatprep.subr.bf16.mxu0 %v666_v8 }
  0x7a   : > { %557 = vmatpush3.bf16.msra.mxu0 %v667_v9 }
  0x7b   : > { %558 = vmatprep.subr.bf16.mxu0 %v668_v10 }
  0x7e   : > { %559 = vmatpush3.bf16.msra.mxu0 %v669_v14 }
  0x7f   : > { %560 = vmatprep.subr.bf16.mxu0 %v670_v16 }
  0x82   : > { %561 = vmatpush3.bf16.msra.mxu0 %v671_v17 }
  0x83   : > { %562 = vmatprep.subr.bf16.mxu0 %v672_v20 }
  0x86   : > { %563 = vmatpush3.bf16.msra.mxu0 %v673_v22 }
  0x89   : > { %394 = vmatmul.mubr.bf16.vlgmr.msra.gmra.mrb[0].mxu0 %v226_v23 }
 0x15c   : > { %v564_v24 = vpop.f32.mrb[0].mxu0 }
 0x15d   : > { %v565_v25 = vpop.f32.mrb[1].mxu0 }
 0x15e   : > { %v566_v26 = vadd.f32 %v565_v25, %v564_v24  ;;  %v567_v27 = vpop.f32.mrb[2].mxu0 }
 0x15f   : > { %v568_v28 = vpop.f32.mrb[3].mxu0 }
 0x160   : > { %v401_v29 = vand.u32 2147483647, %v566_v26 }
 0x162   : > { %404 = vst [vmem:[%s218_s6] sm:$0xff] %v401_v29 }
 0x163   : > { %771 = shalt.err (!%p768_p5)
}
 0x164   : > { %s772_s21 = scalar_lea.hbm %s1047_s10, 128  ;;  %s776_s11 = scalar_lea.hbm %s1097_s3, 384 }
 0x165   : > { %p773_p6 = scmp.ne.s32.totalorder %s1047_s10, %s772_s21  ;;  %p777_p12 = scmp.lt.u32.totalorder %s1047_s10, %s1097_s3 }
 0x166   : > { %p778_p0 = scmp.lt.u32.totalorder %s776_s11, %s772_s21  ;;  %p780_p13 = scmp.lt.u32.totalorder %s772_s21, %s1047_s10 }
 0x167   : > { %p774_p7 = pnand %p773_p6, %p1110_p1 }
 0x168   : > { %p779_p2 = por %p778_p0, %p777_p12 }
 0x169   : > { %p775_p9 = pneg %p774_p7 }
 0x16a   : > { %p781_p4 = por %p780_p13, %p779_p2 }
 0x16c   : > { %p782_p8 = pnand %p781_p4, %p775_p9 }
 0x16e   : > { %785 = shalt.err (!%p782_p8)
}
 0x16f   : > { %582 = dma.vmem_to_hbm [thread:$0]  (%p1110_p1), %s1049_s7, 128, %s1047_s10, %s406_s18  }
 0x170 PF: > { %p604_p10 = scmp.ge.s32.totalorder %s844_s17, 2  ;;  %s433_s27 = sand.u32 1, %s824_s12  }
 0x171   : > { %p1111_p11 = scmp.ne.s32.totalorder %s1103_s24, 0  ;;  %s434_s4 = scalar_lea.sflag [#allocation4], %s433_s27 }
 0x173   : > { %p595_p3 = pnand %p604_p10, %p1111_p11 }
 0x175   : > { %819 = dma.done.wait (!%p595_p3), %s434_s4, 128  }
 0x176   : > { %821 = vsyncadd (!%p595_p3), %s434_s4, 4294967168  ;;  %s18_s17 = sadd.s32 1, %s844_s17   ;;  %s1112_s12 = smov %s828_s13 }
 0x177   : > { %p15_p5 = scmp.ge.s32.totalorder %s18_s17, 5   ;;  %s1113_s13 = smov %s832_s14 }
 0x178   : > { %s1114_s14 = smov %s925_s25  ;;  %s1115_s15 = smov %s840_s16 }
 0x179   : > { %s1116_s16 = smov %s1118_s20  ;;  %17 = sbr.rel (!%p15_p5) target bundleno = 6 (0x6), region = 80 }
 0x180   :  { %439 = vsyncpa [#allocation3], 1 }
 0x181   :  { %441 = vsyncpa [#allocation3 + $0x1], 1 }
 0x182   :  { %442 = vsyncpa [#allocation6], 1 }
 0x183   :  { %443 = vsyncpa [#allocation4], 1 }
 0x184   :  { %445 = vsyncpa [#allocation4 + $0x1], 1 }

// kernel: tpu_custom_call.1
= control target key start
LH: loop header
LB: loop body
LE: loop exit
PB: predicated region body
PF: predicated region fallthrough
CT: control target
= control target key end

     0   :  { %8 = vsyncpa [#allocation3], 0  ;;  %s1094_s0 = inlined_call_operand.hbm [shape: f32[8,256], index: 0, kind: input, shape index: {}]   ;;  %s1095_s1 = inlined_call_operand.hbm [shape: f32[8,256], index: 1, kind: input, shape index: {}]   ;;  %s1096_s2 = inlined_call_operand.hbm [shape: bf16[256,384], index: 2, kind: input, shape index: {}]   ;;  %s1097_s3 = inlined_call_operand.hbm [shape: f32[8,384], index: 3, kind: output, shape index: {}]  }
   0x1   :  { %9 = vsyncpa [#allocation6], 0 }
   0x2   :  { %10 = vsyncpa [#allocation4], 0 }
   0x3   :  { %12 = vsyncpa [#allocation4 + $0x1], 0  ;;  %s872_s12 = smov 0   ;;  %s874_s13 = smov 0  }
   0x4   :  { %s876_s14 = smov 0   ;;  %s878_s15 = smov 0  }
   0x5   :  { %s880_s16 = smov 0   ;;  %s882_s17 = smov 0  }
   0x6 LB: > { %s515_s18 = sadd.s32 4294967295, %s844_s17   ;;  %s516_s19 = sadd.s32 4294967294, %s844_s17   ;;  %s844_s17 = sphi %s882_s17, %s18_s17   ;;  %s840_s16 = sphi %s880_s16, %s1116_s16   ;;  %s836_s15 = sphi %s878_s15, %s1115_s15   ;;  %s832_s14 = sphi %s876_s14, %s1114_s14   ;;  %s828_s13 = sphi %s874_s13, %s1113_s13   ;;  %s824_s12 = sphi %s872_s12, %s1112_s12  }
   0x7   : > { %s27_s20 = sadd.s32 1, %s840_s16  ;;  %s112_s21 = sadd.s32 1, %s832_s14 }
   0x8   : > { %p28_p0 = scmp.ge.s32.totalorder %s27_s20, 3  ;;  %p122_p1 = scmp.ne.s32.totalorder %s832_s14, %s828_s13 }
   0x9   : > { %p123_p2 = scmp.eq.s32.totalorder %s515_s18, 2  ;;  %p128_p3 = scmp.ne.s32.totalorder %s828_s13, %s824_s12 }
   0xa   : > { %s1118_s20 = smov (%p28_p0, %s27_s20), 0  ;;  %p129_p5 = scmp.eq.s32.totalorder %s516_s19, 2 }
   0xb   : > { %p912_p4 = por %p123_p2, %p122_p1  ;;  %s108_s23 = ssub.s32 %s840_s16, %s1118_s20 }
   0xc   : > { %p517_p6 = scmp.ge.s32.totalorder %s844_s17, 1  ;;  %p110_p7 = scmp.eq.s32.totalorder %s108_s23, 0 }
   0xd   : > { %s1102_s22 = scalar_select %p912_p4, 1, 0 }
   0xe   : > { %p919_p8 = por %p129_p5, %p128_p3  ;;  %p136_p9 = scmp.lt.s32.totalorder %s844_s17, 4 }
   0xf   : > { %s925_s25 = scalar_select %p110_p7, %s832_s14, %s112_s21  }
  0x10   : > { %s1103_s24 = scalar_select %p919_p8, 1, 0 }
  0x11   : > { %p927_p10 = pnand %p517_p6, %p136_p9  ;;  %p931_p11 = scmp.eq.s32.totalorder %s515_s18, 0 }
  0x12   : > { %s846_s28 = smov [#allocation5]   ;;  %s847_s4 = smov [#allocation2]  }
  0x13   : > { %s1104_s26 = scalar_select %p927_p10, 1, 0 }
  0x14   : > { %s1105_s27 = scalar_select %p931_p11, 1, 0 }
  0x15   : > { %p584_p12 = pneg %p927_p10  ;;  %s166_s29 = sshll.u32 %s846_s28, 4  ;;  %s167_s29 = int_to_ptr.vmem [resolvable:$true] %s166_s29 }
  0x16   : > { %s152_s5 = sshll.u32 %s847_s4, 4  ;;  %s674_s8 = scalar_lea.hbm %s1095_s1, 256  ;;  %s943_s5 = int_to_ptr.vmem [resolvable:$true] %s152_s5 }
  0x17   : > { %p939_p13 = pnand %p931_p11, %p584_p12  ;;  %p675_p0 = scmp.ne.s32.totalorder %s1095_s1, %s674_s8 }
  0x18   : > { %p681_p5 = scmp.lt.u32.totalorder %s674_s8, %s1095_s1 }
  0x19   : > { %p953_p1 = pneg %p939_p13 }
  0x1b   : > { %p677_p2 = pnand %p953_p1, %p675_p0 }
  0x1d   : > { %p678_p3 = pneg %p677_p2 }
  0x1f   : > { %p683_p6 = pnand %p681_p5, %p678_p3 }
  0x21   : > { %686 = shalt.err (!%p683_p6)
}
  0x22   : > { %s687_s21 = scalar_lea.vmem %s167_s29, 256  ;;  %p695_p8 = scmp.lt.s32.totalorder %s167_s29, %s167_s29 }
  0x23   : > { %p688_p7 = scmp.ne.s32.totalorder %s167_s29, %s687_s21  ;;  %p696_p4 = scmp.lt.s32.totalorder %s687_s21, %s687_s21 }
  0x25   : > { %p690_p9 = pnand %p688_p7, %p953_p1  ;;  %p697_p11 = por %p696_p4, %p695_p8 }
  0x27   : > { %p691_p12 = pneg %p690_p9 }
  0x29   : > { %p698_p10 = pnand %p697_p11, %p691_p12 }
  0x2b   : > { %701 = shalt.err (!%p698_p10)
}
  0x2c   : > { %590 = dma.hbm_to_vmem [thread:$0]  (!%p939_p13), %s1095_s1, 256, %s167_s29, [#allocation6]  }
  0x2d   : > { %s702_s7 = scalar_lea.hbm %s1094_s0, 256 }
  0x2e   : > { %p703_p0 = scmp.ne.s32.totalorder %s1094_s0, %s702_s7  ;;  %p709_p8 = scmp.lt.u32.totalorder %s702_s7, %s1094_s0 }
  0x30   : > { %p705_p2 = pnand %p703_p0, %p953_p1 }
  0x32   : > { %p706_p4 = pneg %p705_p2 }
  0x34   : > { %p711_p10 = pnand %p709_p8, %p706_p4 }
  0x36   : > { %714 = shalt.err (!%p711_p10)
}
  0x37   : > { %s715_s29 = scalar_lea.vmem %s943_s5, 256  ;;  %p723_p6 = scmp.lt.s32.totalorder %s943_s5, %s943_s5 }
  0x38   : > { %p716_p11 = scmp.ne.s32.totalorder %s943_s5, %s715_s29  ;;  %p724_p7 = scmp.lt.s32.totalorder %s715_s29, %s715_s29 }
  0x3a   : > { %p718_p3 = pnand %p716_p11, %p953_p1  ;;  %p725_p9 = por %p724_p7, %p723_p6 }
  0x3c   : > { %p719_p5 = pneg %p718_p3 }
  0x3e   : > { %p726_p12 = pnand %p725_p9, %p719_p5 }
  0x40   : > { %729 = shalt.err (!%p726_p12)
}
  0x41   : > { %587 = dma.hbm_to_vmem [thread:$0]  (!%p939_p13), %s1094_s0, 256, %s943_s5, [#allocation3]  }
  0x42   : > { %s848_s23 = smov [#allocation7]   ;;  %s730_s7 = scalar_lea.hbm %s1096_s2, 6144 }
  0x43   : > { %s176_s28 = sshll.u32 %s848_s23, 4  ;;  %p731_p0 = scmp.ne.s32.totalorder %s1096_s2, %s730_s7  ;;  %s177_s28 = int_to_ptr.vmem [resolvable:$true] %s176_s28 }
  0x44   : > { %p737_p8 = scmp.lt.u32.totalorder %s730_s7, %s1096_s2 }
  0x45   : > { %p733_p2 = pnand %p731_p0, %p953_p1 }
  0x47   : > { %p734_p4 = pneg %p733_p2 }
  0x49   : > { %p739_p10 = pnand %p737_p8, %p734_p4 }
  0x4b   : > { %742 = shalt.err (!%p739_p10)
}
  0x4c   : > { %s743_s5 = scalar_lea.vmem %s177_s28, 6144  ;;  %p751_p6 = scmp.lt.s32.totalorder %s177_s28, %s177_s28 }
  0x4d   : > { %p744_p11 = scmp.ne.s32.totalorder %s177_s28, %s743_s5  ;;  %p752_p7 = scmp.lt.s32.totalorder %s743_s5, %s743_s5 }
  0x4f   : > { %p746_p3 = pnand %p744_p11, %p953_p1  ;;  %p753_p9 = por %p752_p7, %p751_p6 }
  0x51   : > { %p747_p5 = pneg %p746_p3 }
  0x53   : > { %p754_p12 = pnand %p753_p9, %p747_p5 }
  0x55   : > { %757 = shalt.err (!%p754_p12)
}
  0x56   : > { %s849_s29 = smov 192   ;;  %s850_s19 = smov 12  }
  0x57   : > { %593 = dma.hbm_to_vmem [thread:$0]  (!%p939_p13), %s1096_s2, 6144, %s177_s28, [#allocation6], %s849_s29, %s849_s29, %s850_s19  }
  0x58   : > { %p1108_p0 = scmp.ne.s32.totalorder %s1104_s26, 0 }
  0x59   : > { %p1109_p2 = scmp.ne.s32.totalorder (!%p1108_p0), %s1105_s27, 0 }
  0x5a   : > { %192 = sbr.rel (%p1108_p0) target bundleno = 368 (0x170), region = 32 }
  0x61   : > { %811 = dma.done.wait (%p1109_p2), [#allocation3], 256  }
  0x62   : > { %813 = vsyncadd (%p1109_p2), [#allocation3], 4294967040 }
  0x63   : > { %815 = dma.done.wait (%p1109_p2), [#allocation6], 6400  }
  0x64   : > { %817 = vsyncadd (%p1109_p2), [#allocation6], 4294960896  ;;  %s526_s30 = sshll.u32 %s836_s15, 7  ;;  %v221_v11 = vld [vmem:[#allocation2 + $0x8] sm:$0xff]  ;;  %v223_v12 = vld [vmem:[#allocation5 + $0x8] sm:$0xff]  ;;  %s216_s27 = sand.u32 1, %s828_s13  }
  0x65   : > { %s229_s11 = sshra.s32 %s526_s30, 7  ;;  %v225_v13 = vsub.f32 %v221_v11, %v223_v12  ;;  %v220_v18 = vld [vmem:[#allocation2] sm:$0xff]  ;;  %v222_v19 = vld [vmem:[#allocation5] sm:$0xff]  ;;  %s525_s4 = sshll.u32 %s216_s27, 3 }
  0x66   : > { %s527_s28 = sshll.u32 %s229_s11, 2  ;;  %v224_v21 = vsub.f32 %v220_v18, %v222_v19  ;;  %s218_s6 = scalar_lea.vmem [#allocation8], %s525_s4 }
  0x67   : > { %s1023_s26 = scalar_lea.vmem [#allocation7], %s527_s28  ;;  %v227_v15 = vpack.c.bf16 %v225_v13, %v225_v13  ;;  %s421_s7 = sshll.u32 %s218_s6, 4  ;;  %s1049_s7 = int_to_ptr.vmem [resolvable:$true] %s421_s7 }
  0x68   : > { %v658_v0 = vld [vmem:[%s1023_s26 + $0xc0] ss:$12 sps:$4 sm:$0xff]   ;;  %v660_v2 = vld [vmem:[%s1023_s26 + $0xd8] ss:$12 sps:$4 sm:$0xff]   ;;  %v662_v4 = vld [vmem:[%s1023_s26 + $0xf0] ss:$12 sps:$4 sm:$0xff]   ;;  %v226_v23 = vpack.c.bf16 %v224_v21, %v224_v21  ;;  %s1047_s10 = scalar_lea.hbm %s1097_s3, %s526_s30 }
  0x69   : > { %v659_v1 = vld [vmem:[%s1023_s26] ss:$12 sps:$4 sm:$0xff]   ;;  %548 = vmatprep.subr.bf16.mxu0 %v658_v0  ;;  %v661_v3 = vld [vmem:[%s1023_s26 + $0x18] ss:$12 sps:$4 sm:$0xff]   ;;  %v663_v5 = vld [vmem:[%s1023_s26 + $0x30] ss:$12 sps:$4 sm:$0xff]   ;;  %393 = vmatprep.mubr.bf16.mxu0 %v227_v15 }
  0x6a   : > { %549 = vmatpush3.bf16.msra.mxu0 %v659_v1  ;;  %v664_v6 = vld [vmem:[%s1023_s26 + $0x108] ss:$12 sps:$4 sm:$0xff]   ;;  %v666_v8 = vld [vmem:[%s1023_s26 + $0x120] ss:$12 sps:$4 sm:$0xff]   ;;  %v668_v10 = vld [vmem:[%s1023_s26 + $0x138] ss:$12 sps:$4 sm:$0xff]  }
  0x6b   : > { %550 = vmatprep.subr.bf16.mxu0 %v660_v2  ;;  %v665_v7 = vld [vmem:[%s1023_s26 + $0x48] ss:$12 sps:$4 sm:$0xff]   ;;  %v667_v9 = vld [vmem:[%s1023_s26 + $0x60] ss:$12 sps:$4 sm:$0xff]   ;;  %v669_v14 = vld [vmem:[%s1023_s26 + $0x78] ss:$12 sps:$4 sm:$0xff]  }
  0x6c   : > { %v670_v16 = vld [vmem:[%s1023_s26 + $0x150] ss:$12 sps:$4 sm:$0xff]   ;;  %v672_v20 = vld [vmem:[%s1023_s26 + $0x168] ss:$12 sps:$4 sm:$0xff]   ;;  %s406_s18 = scalar_lea.sflag [#allocation4], %s216_s27  ;;  %s758_s5 = scalar_lea.vmem %s1049_s7, 128 }
  0x6d   : > { %v671_v17 = vld [vmem:[%s1023_s26 + $0x90] ss:$12 sps:$4 sm:$0xff]   ;;  %v673_v22 = vld [vmem:[%s1023_s26 + $0xa8] ss:$12 sps:$4 sm:$0xff]   ;;  %p759_p13 = scmp.ne.s32.totalorder %s1049_s7, %s758_s5  ;;  %p1110_p1 = scmp.ne.s32.totalorder %s1102_s22, 0 }
  0x6e   : > { %551 = vmatpush3.bf16.msra.mxu0 %v661_v3  ;;  %s851_s29 = smov [#allocation8]  }
  0x6f   : > { %552 = vmatprep.subr.bf16.mxu0 %v662_v4  ;;  %p760_p4 = pnand %p759_p13, %p1110_p1  ;;  %s762_s19 = sshll.u32 %s851_s29, 4  ;;  %s763_s19 = int_to_ptr.vmem [resolvable:$false] %s762_s19 }
  0x70   : > { %s764_s15 = scalar_lea.vmem %s763_s19, 256  ;;  %p765_p10 = scmp.lt.s32.totalorder %s1049_s7, %s763_s19 }
  0x71   : > { %p761_p8 = pneg %p760_p4  ;;  %p766_p11 = scmp.lt.s32.totalorder %s764_s15, %s758_s5 }
  0x72   : > { %553 = vmatpush3.bf16.msra.mxu0 %v663_v5 }
  0x73   : > { %554 = vmatprep.subr.bf16.mxu0 %v664_v6  ;;  %p767_p3 = por %p766_p11, %p765_p10 }
  0x75   : > { %p768_p5 = pnand %p767_p3, %p761_p8 }
  0x76   : > { %555 = vmatpush3.bf16.msra.mxu0 %v665_v7 }
  0x77   : > { %556 = vmatprep.subr.bf16.mxu0 %v666_v8 }
  0x7a   : > { %557 = vmatpush3.bf16.msra.mxu0 %v667_v9 }
  0x7b   : > { %558 = vmatprep.subr.bf16.mxu0 %v668_v10 }
  0x7e   : > { %559 = vmatpush3.bf16.msra.mxu0 %v669_v14 }
  0x7f   : > { %560 = vmatprep.subr.bf16.mxu0 %v670_v16 }
  0x82   : > { %561 = vmatpush3.bf16.msra.mxu0 %v671_v17 }
  0x83   : > { %562 = vmatprep.subr.bf16.mxu0 %v672_v20 }
  0x86   : > { %563 = vmatpush3.bf16.msra.mxu0 %v673_v22 }
  0x89   : > { %394 = vmatmul.mubr.bf16.vlgmr.msra.gmra.mrb[0].mxu0 %v226_v23 }
 0x15c   : > { %v564_v24 = vpop.f32.mrb[0].mxu0 }
 0x15d   : > { %v565_v25 = vpop.f32.mrb[1].mxu0 }
 0x15e   : > { %v566_v26 = vadd.f32 %v565_v25, %v564_v24  ;;  %v567_v27 = vpop.f32.mrb[2].mxu0 }
 0x15f   : > { %v568_v28 = vpop.f32.mrb[3].mxu0 }
 0x160   : > { %v401_v29 = vand.u32 2147483647, %v566_v26 }
 0x162   : > { %404 = vst [vmem:[%s218_s6] sm:$0xff] %v401_v29 }
 0x163   : > { %771 = shalt.err (!%p768_p5)
}
 0x164   : > { %s772_s21 = scalar_lea.hbm %s1047_s10, 128  ;;  %s776_s11 = scalar_lea.hbm %s1097_s3, 384 }
 0x165   : > { %p773_p6 = scmp.ne.s32.totalorder %s1047_s10, %s772_s21  ;;  %p777_p12 = scmp.lt.u32.totalorder %s1047_s10, %s1097_s3 }
 0x166   : > { %p778_p0 = scmp.lt.u32.totalorder %s776_s11, %s772_s21  ;;  %p780_p13 = scmp.lt.u32.totalorder %s772_s21, %s1047_s10 }
 0x167   : > { %p774_p7 = pnand %p773_p6, %p1110_p1 }
 0x168   : > { %p779_p2 = por %p778_p0, %p777_p12 }
 0x169   : > { %p775_p9 = pneg %p774_p7 }
 0x16a   : > { %p781_p4 = por %p780_p13, %p779_p2 }
 0x16c   : > { %p782_p8 = pnand %p781_p4, %p775_p9 }
 0x16e   : > { %785 = shalt.err (!%p782_p8)
}
 0x16f   : > { %582 = dma.vmem_to_hbm [thread:$0]  (%p1110_p1), %s1049_s7, 128, %s1047_s10, %s406_s18  }
 0x170 PF: > { %p604_p10 = scmp.ge.s32.totalorder %s844_s17, 2  ;;  %s433_s27 = sand.u32 1, %s824_s12  }
 0x171   : > { %p1111_p11 = scmp.ne.s32.totalorder %s1103_s24, 0  ;;  %s434_s4 = scalar_lea.sflag [#allocation4], %s433_s27 }
 0x173   : > { %p595_p3 = pnand %p604_p10, %p1111_p11 }
 0x175   : > { %819 = dma.done.wait (!%p595_p3), %s434_s4, 128  }
 0x176   : > { %821 = vsyncadd (!%p595_p3), %s434_s4, 4294967168  ;;  %s18_s17 = sadd.s32 1, %s844_s17   ;;  %s1112_s12 = smov %s828_s13 }
 0x177   : > { %p15_p5 = scmp.ge.s32.totalorder %s18_s17, 5   ;;  %s1113_s13 = smov %s832_s14 }
 0x178   : > { %s1114_s14 = smov %s925_s25  ;;  %s1115_s15 = smov %s840_s16 }
 0x179   : > { %s1116_s16 = smov %s1118_s20  ;;  %17 = sbr.rel (!%p15_p5) target bundleno = 6 (0x6), region = 80 }
 0x180   :  { %439 = vsyncpa [#allocation3], 1 }
 0x181   :  { %441 = vsyncpa [#allocation3 + $0x1], 1 }
 0x182   :  { %442 = vsyncpa [#allocation6], 1 }
 0x183   :  { %443 = vsyncpa [#allocation4], 1 }
 0x184   :  { %445 = vsyncpa [#allocation4 + $0x1], 1 }

</bundles_post_ra>
